<compile_context>
chip_gen: v5e
topology: v5e:2x2
jax: 0.10.0
libtpu: 0.0.40
codegen_flags: <defaults>
</compile_context>

<pallas_src>
import functools

import jax
import jax.numpy as jnp
from jax.experimental import pallas as pl
from jax.experimental.pallas import tpu as pltpu


# ----------------------------------------------------------------------------
# Kernels
# ----------------------------------------------------------------------------

def _eca_fused_kernel(w_ref, x_ref, o_ref, *, k_size):
    # w_ref: (k_size,) f32 in SMEM  -- Conv1d(1, 1, k_size, bias=False) weight
    # x_ref: (C, HW) block in VMEM  -- one batch element, native dtype
    # o_ref: (C, HW) block in VMEM
    C = x_ref.shape[0]
    pad = (k_size - 1) // 2

    # AdaptiveAvgPool2d(1): f32-accumulated mean over the spatial (lane) axis.
    # No f32 copy of x is materialized.
    m = jnp.mean(x_ref[...], axis=-1, keepdims=True, dtype=jnp.float32)  # (C, 1)

    # Conv1d along the channel axis, zero padding, cross-correlation (PyTorch
    # semantics): y[c] = sum_t w[t] * m[c - pad + t].  This runs on a (C, 1)
    # vector and is negligible next to the HBM-bound stream; the split path
    # hoists the gate out of the kernel entirely.
    if pad > 0:
        z = jnp.zeros((pad, 1), jnp.float32)
        mp = jnp.concatenate([z, m, z], axis=0)                          # (C + 2p, 1)
    else:
        mp = m
    y = jnp.zeros((C, 1), jnp.float32)
    for t in range(k_size):                                              # static unroll
        y = y + w_ref[t] * mp[t:t + C, :]

    # Sigmoid gate, broadcast over spatial dim, multiply in the native dtype.
    g = jax.nn.sigmoid(y)                                                # (C, 1) f32
    o_ref[...] = (x_ref[...] * g.astype(o_ref.dtype)).astype(o_ref.dtype)


def _eca_scale_kernel(g_ref, x_ref, o_ref):
    # g_ref: (c_tile, 1) f32 gate block; x_ref / o_ref: (c_tile, hw_tile) blocks.
    x = x_ref[...]
    o_ref[...] = (x * g_ref[...].astype(x.dtype)).astype(o_ref.dtype)


# ----------------------------------------------------------------------------
# Wrapper helpers
# ----------------------------------------------------------------------------

def _round_down(x, m):
    return (x // m) * m


def _vmem_budget_bytes():
    # Per-core VMEM capacity (v5e/v6e: 128 MiB, v7x: 64 MiB) with headroom for
    # compiler-internal scratch.  Conservative (v7x-sized) fallback if the
    # query is unavailable.
    try:
        cap = int(pltpu.get_tpu_info().vmem_capacity_bytes)
    except Exception:
        cap = 64 << 20
    return (cap * 3) // 4


def _eca_gate(x2, w, k_size):
    """Pooled mean + k-tap channel conv + sigmoid on the tiny (N, C) tensor."""
    _, C, _ = x2.shape
    pad = (k_size - 1) // 2
    m = jnp.mean(x2, axis=-1, dtype=jnp.float32)                 # (N, C)
    mp = jnp.pad(m, ((0, 0), (pad, pad)))                        # (N, C + 2p)
    y = sum(w[t] * mp[:, t:t + C] for t in range(k_size))        # (N, C)
    return jax.nn.sigmoid(y)                                     # (N, C) f32


def _pick_scale_tiles(C, HW, itemsize, target_block_bytes=2 << 20):
    """Pick lane-dense (c_tile, hw_tile) blocks of roughly target_block_bytes.

    c_tile is a multiple of 8 (or the full C); hw_tile is a multiple of 128
    (or the full HW when HW <= 128 — masked tail stores are unavoidable there).
    """
    row_cap = min(C, 8)
    hw_cap = max(128, _round_down(target_block_bytes // (row_cap * itemsize), 128))
    if HW <= 128:
        hw_tile = HW
    else:
        hw_tile = max(128, min(_round_down(HW, 128), hw_cap))
    rows = max(1, target_block_bytes // (hw_tile * itemsize))
    if C <= 8 or C <= rows:
        c_tile = C
    else:
        c_tile = max(8, _round_down(min(rows, C), 8))
    return c_tile, hw_tile


# ----------------------------------------------------------------------------
# Public forward
# ----------------------------------------------------------------------------

def eca_forward(x, conv_weight, k_size=3, *, force_split=False):
    """x: (N, C, H, W); conv_weight: (1, 1, k_size) like PyTorch Conv1d weight."""
    N, C, H, W = x.shape
    HW = H * W
    itemsize = jnp.dtype(x.dtype).itemsize
    x2 = x.reshape(N, C, HW)
    w = conv_weight.reshape(k_size).astype(jnp.float32)
    budget = _vmem_budget_bytes()

    # Fused path guard: double-buffered in + out slabs must fit the VMEM budget,
    # stores must be lane-dense (HW % 128 == 0), and the grid should have at
    # least a couple of steps so both v7x TensorCores get work.
    slab = C * HW * itemsize
    fused_bytes = 4 * slab + (1 << 20)
    use_fused = ((not force_split) and (HW % 128 == 0) and (N >= 2)
                 and (fused_bytes <= budget))

    if use_fused:
        vmem_limit = int(min(budget, max(fused_bytes + (2 << 20), 32 << 20)))
        cost = pl.CostEstimate(
            flops=int(2 * N * C * HW),
            transcendentals=int(N * C),
            bytes_accessed=int(2 * N * C * HW * itemsize),
        )
        out = pl.pallas_call(
            functools.partial(_eca_fused_kernel, k_size=k_size),
            out_shape=jax.ShapeDtypeStruct((N, C, HW), x.dtype),
            grid_spec=pltpu.PrefetchScalarGridSpec(
                num_scalar_prefetch=0,
                grid=(N,),
                in_specs=[
                    pl.BlockSpec(memory_space=pltpu.MemorySpace.SMEM),   # conv weight
                    pl.BlockSpec((None, C, HW), lambda n: (n, 0, 0)),    # x slab
                ],
                out_specs=pl.BlockSpec((None, C, HW), lambda n: (n, 0, 0)),
            ),
            compiler_params=pltpu.CompilerParams(
                dimension_semantics=("parallel",),
                vmem_limit_bytes=vmem_limit,
            ),
            cost_estimate=cost,
        )(w, x2)
        return out.reshape(N, C, H, W)

    # ---- Split path: gate in plain XLA, lane-dense tiled multiply in Pallas ----
    # TODO(synk): for HW not a multiple of 128 the tail stores are masked; a
    # flatten-to-(C*HW) repack with per-element channel indexing could make them
    # fully lane-dense, at the cost of an in-kernel gather for the gate.
    g = _eca_gate(x2, w, k_size).reshape(N, C, 1)                # (N, C, 1) f32
    c_tile, hw_tile = _pick_scale_tiles(C, HW, itemsize)
    block_bytes = c_tile * hw_tile * itemsize
    vmem_limit = int(min(budget, max(4 * block_bytes + (2 << 20), 32 << 20)))
    grid = (N, pl.cdiv(C, c_tile), pl.cdiv(HW, hw_tile))
    cost = pl.CostEstimate(
        flops=int(N * C * HW),
        transcendentals=0,
        bytes_accessed=int(2 * N * C * HW * itemsize + N * C * 4),
    )
    out = pl.pallas_call(
        _eca_scale_kernel,
        out_shape=jax.ShapeDtypeStruct((N, C, HW), x.dtype),
        grid_spec=pltpu.PrefetchScalarGridSpec(
            num_scalar_prefetch=0,
            grid=grid,
            in_specs=[
                pl.BlockSpec((None, c_tile, 1), lambda n, ci, hi: (n, ci, 0)),
                pl.BlockSpec((None, c_tile, hw_tile), lambda n, ci, hi: (n, ci, hi)),
            ],
            out_specs=pl.BlockSpec((None, c_tile, hw_tile),
                                   lambda n, ci, hi: (n, ci, hi)),
        ),
        compiler_params=pltpu.CompilerParams(
            dimension_semantics=("parallel", "parallel", "parallel"),
            vmem_limit_bytes=vmem_limit,
        ),
        cost_estimate=cost,
    )(g, x2)
    return out.reshape(N, C, H, W)


# ----------------------------------------------------------------------------
# Pure-JAX reference mirroring the PyTorch forward
# ----------------------------------------------------------------------------

def eca_reference(x, conv_weight, k_size=3):
    w = conv_weight.reshape(k_size).astype(jnp.float32)
    pad = (k_size - 1) // 2
    C = x.shape[1]
    m = jnp.mean(x.astype(jnp.float32), axis=(2, 3))             # (N, C)
    mp = jnp.pad(m, ((0, 0), (pad, pad)))                        # (N, C + 2p)
    y = sum(w[t] * mp[:, t:t + C] for t in range(k_size))        # (N, C)
    g = jax.nn.sigmoid(y)[:, :, None, None]                      # (N, C, 1, 1)
    return (x.astype(jnp.float32) * g).astype(x.dtype)


# ----------------------------------------------------------------------------
# Demo / correctness check
# ----------------------------------------------------------------------------

if __name__ == "__main__":
    key = jax.random.PRNGKey(0)
    kx, kw = jax.random.split(key)

    # Primary test: fused single-pass path (HW = 256, multiple of 128, fits VMEM).
    N, C, H, W = 2, 4, 16, 16
    k_size = 3
    x = jax.random.normal(kx, (N, C, H, W), dtype=jnp.float32)
    conv_weight = jax.random.normal(kw, (1, 1, k_size), dtype=jnp.float32) * 0.5

    ref = eca_reference(x, conv_weight, k_size=k_size)

    out_fused = eca_forward(x, conv_weight, k_size=k_size)
    jax.block_until_ready(out_fused)
    assert out_fused.shape == x.shape and out_fused.dtype == x.dtype
    assert jnp.allclose(out_fused, ref, atol=1e-5, rtol=1e-5), "fused path mismatch"

    # Same input through the split (hoisted-gate + tiled multiply) path.
    out_split = eca_forward(x, conv_weight, k_size=k_size, force_split=True)
    jax.block_until_ready(out_split)
    assert jnp.allclose(out_split, ref, atol=1e-5, rtol=1e-5), "split path mismatch"

    # Fused path with a different channel count / kernel size (HW = 128).
    xb = jax.random.normal(kx, (2, 32, 8, 16), dtype=jnp.float32)
    wb = jax.random.normal(kw, (1, 1, 5), dtype=jnp.float32) * 0.3
    out_b = eca_forward(xb, wb, k_size=5)
    jax.block_until_ready(out_b)
    assert jnp.allclose(out_b, eca_reference(xb, wb, k_size=5),
                        atol=1e-5, rtol=1e-5), "fused k=5 mismatch"

    # Non-128-multiple spatial size exercises the tiled split path automatically.
    xc = jax.random.normal(kx, (2, 16, 10, 10), dtype=jnp.float32)
    out_c = eca_forward(xc, conv_weight, k_size=3)
    jax.block_until_ready(out_c)
    assert jnp.allclose(out_c, eca_reference(xc, conv_weight, k_size=3),
                        atol=1e-5, rtol=1e-5), "auto split path mismatch"

    print("KERNEL_OK")
</pallas_src>

<mosaic_0001>
module attributes {stable_mosaic.version = 11 : i64} {
  func.func @_eca_fused_kernel(%arg0: i32, %arg1: memref<3xf32, #tpu.memory_space<smem>>, %arg2: memref<1x4x256xf32, #tpu.memory_space<vmem>>, %arg3: memref<1x4x256xf32, #tpu.memory_space<vmem>>) attributes {dimension_semantics = [#tpu.dimension_semantics<parallel>], iteration_bounds = array<i64: 2>, scalar_prefetch = 0 : i64, scratch_operands = 0 : i64, tpu.core_type = #tpu.core_type<tc>, window_params = [{transform_indices = @transform_0, window_bounds = array<i64: 3>}, {transform_indices = @transform_1, window_bounds = array<i64: 1, 4, 256>}, {transform_indices = @transform_2, window_bounds = array<i64: 1, 4, 256>}]} {
    %c0 = arith.constant 0 : index
    %c0_0 = arith.constant 0 : index
    %c0_1 = arith.constant 0 : index
    %0 = vector.load %arg2[%c0, %c0_0, %c0_1] : memref<1x4x256xf32, #tpu.memory_space<vmem>>, vector<1x4x256xf32>
    %1 = vector.shape_cast %0 : vector<1x4x256xf32> to vector<4x256xf32>
    %cst = arith.constant dense<0.000000e+00> : vector<4xf32>
    %2 = vector.multi_reduction <add>, %1, %cst [1] : vector<4x256xf32> to vector<4xf32>
    %3 = vector.shape_cast %2 : vector<4xf32> to vector<4x1xf32>
    %cst_2 = arith.constant 2.560000e+02 : f32
    %4 = vector.broadcast %cst_2 : f32 to vector<4x1xf32>
    %5 = arith.divf %3, %4 : vector<4x1xf32>
    %cst_3 = arith.constant 0.000000e+00 : f32
    %6 = vector.broadcast %cst_3 : f32 to vector<1x1xf32>
    %7 = tpu.concatenate %6, %5, %6 in 0 : vector<1x1xf32>, vector<4x1xf32>, vector<1x1xf32> -> vector<6x1xf32>
    %cst_4 = arith.constant 0.000000e+00 : f32
    %8 = vector.broadcast %cst_4 : f32 to vector<4x1xf32>
    %c0_5 = arith.constant 0 : index
    %9 = memref.load %arg1[%c0_5] : memref<3xf32, #tpu.memory_space<smem>>
    %10 = vector.extract_strided_slice %7 {offsets = [0, 0], sizes = [4, 1], strides = [1, 1]} : vector<6x1xf32> to vector<4x1xf32>
    %11 = vector.broadcast %9 : f32 to vector<4x1xf32>
    %12 = arith.mulf %11, %10 : vector<4x1xf32>
    %13 = arith.addf %8, %12 : vector<4x1xf32>
    %c1 = arith.constant 1 : index
    %14 = memref.load %arg1[%c1] : memref<3xf32, #tpu.memory_space<smem>>
    %15 = vector.extract_strided_slice %7 {offsets = [1, 0], sizes = [4, 1], strides = [1, 1]} : vector<6x1xf32> to vector<4x1xf32>
    %16 = vector.broadcast %14 : f32 to vector<4x1xf32>
    %17 = arith.mulf %16, %15 : vector<4x1xf32>
    %18 = arith.addf %13, %17 : vector<4x1xf32>
    %c2 = arith.constant 2 : index
    %19 = memref.load %arg1[%c2] : memref<3xf32, #tpu.memory_space<smem>>
    %20 = vector.extract_strided_slice %7 {offsets = [2, 0], sizes = [4, 1], strides = [1, 1]} : vector<6x1xf32> to vector<4x1xf32>
    %21 = vector.broadcast %19 : f32 to vector<4x1xf32>
    %22 = arith.mulf %21, %20 : vector<4x1xf32>
    %23 = arith.addf %18, %22 : vector<4x1xf32>
    %24 = arith.negf %23 : vector<4x1xf32>
    %25 = math.exp %24 : vector<4x1xf32>
    %cst_6 = arith.constant 1.000000e+00 : f32
    %26 = vector.broadcast %cst_6 : f32 to vector<4x1xf32>
    %27 = arith.addf %26, %25 : vector<4x1xf32>
    %28 = arith.divf %26, %27 : vector<4x1xf32>
    %c0_7 = arith.constant 0 : index
    %c0_8 = arith.constant 0 : index
    %c0_9 = arith.constant 0 : index
    %29 = vector.load %arg2[%c0_7, %c0_8, %c0_9] : memref<1x4x256xf32, #tpu.memory_space<vmem>>, vector<1x4x256xf32>
    %30 = vector.shape_cast %29 : vector<1x4x256xf32> to vector<4x256xf32>
    %31 = vector.broadcast %28 : vector<4x1xf32> to vector<4x256xf32>
    %32 = arith.mulf %30, %31 : vector<4x256xf32>
    %c0_10 = arith.constant 0 : index
    %c0_11 = arith.constant 0 : index
    %c0_12 = arith.constant 0 : index
    %33 = vector.load %arg3[%c0_10, %c0_11, %c0_12] : memref<1x4x256xf32, #tpu.memory_space<vmem>>, vector<1x4x256xf32>
    %34 = vector.shape_cast %33 : vector<1x4x256xf32> to vector<4x256xf32>
    %35 = vector.shape_cast %32 : vector<4x256xf32> to vector<1x4x256xf32>
    tpu.vector_store %arg3[%c0_10, %c0_11, %c0_12], %35 {strides = array<i32>} : memref<1x4x256xf32, #tpu.memory_space<vmem>>, vector<1x4x256xf32>,
    return
  }
  func.func @transform_0(%arg0: i32) -> i32 {
    %c0_i32 = arith.constant 0 : i32
    %c0_i32_0 = arith.constant 0 : i32
    return %c0_i32 : i32
  }
  func.func @transform_1(%arg0: i32) -> (i32, i32, i32) {
    %c0_i32 = arith.constant 0 : i32
    %c0_i32_0 = arith.constant 0 : i32
    %c0_i32_1 = arith.constant 0 : i32
    return %arg0, %c0_i32, %c0_i32_0 : i32, i32, i32
  }
  func.func @transform_2(%arg0: i32) -> (i32, i32, i32) {
    %c0_i32 = arith.constant 0 : i32
    %c0_i32_0 = arith.constant 0 : i32
    %c0_i32_1 = arith.constant 0 : i32
    return %arg0, %c0_i32, %c0_i32_0 : i32, i32, i32
  }
}

</mosaic_0001>

<bundles_post_ra>
// kernel: tpu_custom_call.1
= control target key start
LH: loop header
LB: loop body
LE: loop exit
PB: predicated region body
PF: predicated region fallthrough
CT: control target
= control target key end

     0   :  { %7 = vsyncpa [#allocation5], 0  ;;  %s721_s0 = inlined_call_operand.hbm [shape: f32[3], index: 0, kind: input, shape index: {}]   ;;  %s722_s1 = inlined_call_operand.hbm [shape: f32[2,4,256], index: 1, kind: input, shape index: {}]   ;;  %s723_s2 = inlined_call_operand.hbm [shape: f32[2,4,256], index: 2, kind: output, shape index: {}]  }
   0x1   :  { %8 = vsyncpa [#allocation3], 0 }
   0x2   :  { %10 = vsyncpa [#allocation3 + $0x1], 0 }
   0x3   :  { %11 = vsyncpa [#allocation4], 0 }
   0x4   :  { %13 = vsyncpa [#allocation4 + $0x1], 0  ;;  %s575_s9 = smov 0   ;;  %s577_s10 = smov 0  }
   0x5   :  { %s579_s11 = smov 0   ;;  %s581_s12 = smov 0  }
   0x6 LB: > { %s596_s13 = sadd.s32 4294967295, %s554_s12   ;;  %s351_s14 = sadd.s32 4294967294, %s554_s12   ;;  %s554_s12 = sphi %s581_s12, %s733_s12   ;;  %s550_s11 = sphi %s579_s11, %s732_s11   ;;  %s546_s10 = sphi %s577_s10, %s731_s10   ;;  %s542_s9 = sphi %s575_s9, %s730_s9  }
   0x7   : > { %p60_p0 = scmp.ne.s32.totalorder %s546_s10, %s542_s9  ;;  %p61_p1 = scmp.eq.s32.totalorder %s596_s13, 0 }
   0x8   : > { %p84_p2 = scmp.eq.s32.totalorder %s596_s13, 1  ;;  %p90_p3 = scmp.eq.s32.totalorder %s351_s14, 1 }
   0x9   : > { %p605_p4 = por %p61_p1, %p60_p0  ;;  %p352_p5 = scmp.ge.s32.totalorder %s554_s12, 1 }
   0xa   : > { %p610_p6 = por %p90_p3, %p60_p0  ;;  %p97_p7 = scmp.lt.s32.totalorder %s554_s12, 3 }
   0xb   : > { %s109_s19 = sshll.u32 %s721_s0, 4  ;;  %s626_s21 = sadd.s32 1, %s554_s12   ;;  %s110_s19 = int_to_ptr.hbm [resolvable:$true] %s109_s19 }
   0xc   : > { %p618_p8 = pnand %p352_p5, %p97_p7  ;;  %s44_s22 = ssub.s32 %s554_s12, %s626_s21 }
   0xd   : > { %p45_p12 = scmp.eq.s32.totalorder %s44_s22, 0  ;;  %s47_s23 = sadd.s32 1, %s550_s11 }
   0xe   : > { %p380_p10 = pneg %p618_p8  ;;  %p54_p13 = scmp.ne.s32.totalorder %s550_s11, %s546_s10 }
   0xf   : > { %s556_s24 = smov [#allocation2]   ;;  %p55_p0 = scmp.eq.s32.totalorder %s554_s12, 0 }
  0x10   : > { %p381_p11 = pnand %p380_p10, %p61_p1  ;;  %p641_p3 = por %p84_p2, %p54_p13 }
  0x11   : > { %s636_s25 = scalar_select %p45_p12, %s550_s11, %s47_s23  }
  0x12   : > { %383 = dma.hbm_to_smem (!%p381_p11), %s110_s19, 16, %s556_s24, [#allocation5]  }
  0x13   : > { %s120_s27 = sand.u32 1, %s550_s11   ;;  %p56_p5 = por %p55_p0, %p54_p13 }
  0x14   : > { %p393_p7 = scmp.lt.s32.totalorder %s554_s12, 2  ;;  %s355_s28 = sshll.u32 %s120_s27, 3 }
  0x15   : > { %s370_s29 = sshll.u32 %s554_s12, 3  ;;  %s124_s6 = scalar_lea.vmem [#allocation6], %s355_s28 }
  0x16   : > { %s129_s4 = scalar_lea.hbm %s722_s1, %s370_s29  ;;  %s133_s7 = sshll.u32 %s124_s6, 4  ;;  %s134_s7 = int_to_ptr.vmem [resolvable:$true] %s133_s7 }
  0x17   : > { %s131_s5 = sshll.u32 %s129_s4, 4  ;;  %p651_p10 = pnand %p393_p7, %p56_p5  ;;  %s132_s5 = int_to_ptr.hbm [resolvable:$true] %s131_s5 }
  0x18   : > { %s121_s14 = scalar_lea.sflag [#allocation3], %s120_s27  ;;  %s454_s17 = sshra.s32 %s132_s5, 4  ;;  %s455_s17 = int_to_ptr.hbm [resolvable:$true] %s454_s17 }
  0x19   : > { %s456_s18 = scalar_lea.hbm %s455_s17, 8  ;;  %p458_p11 = pneg %p651_p10 }
  0x1a   : > { %p457_p2 = scmp.ne.s32.totalorder %s455_s17, %s456_s18  ;;  %s461_s23 = scalar_lea.hbm %s722_s1, 16 }
  0x1b   : > { %p462_p0 = scmp.lt.s32.totalorder %s455_s17, %s722_s1  ;;  %p463_p5 = scmp.lt.s32.totalorder %s461_s23, %s456_s18 }
  0x1c   : > { %p459_p12 = pnand %p458_p11, %p457_p2 }
  0x1d   : > { %p464_p7 = por %p463_p5, %p462_p0 }
  0x1e   : > { %p460_p13 = pneg %p459_p12 }
  0x20   : > { %p465_p9 = pnand %p464_p7, %p460_p13 }
  0x22   : > { %468 = shalt.err (!%p465_p9)
}
  0x23   : > { %387 = dma.hbm_to_vmem [thread:$0]  (!%p651_p10), %s132_s5, 128, %s134_s7, %s121_s14  }
  0x24   : > { %142 = sbr.rel (%p618_p8) target bundleno = 340 (0x154), region = 28 }
  0x29   : > { %529 = dma.done.wait (%p61_p1), [#allocation5], 16  }
  0x2a   : > { %531 = vsyncadd (%p61_p1), [#allocation5], 4294967280  ;;  %s672_s27 = sand.u32 1, %s546_s10  }
  0x2b   : > { %s360_s29 = sshll.u32 %s672_s27, 3  ;;  %s150_s30 = scalar_lea.sflag [#allocation3], %s672_s27 }
  0x2c   : > { %s153_s3 = scalar_lea.vmem [#allocation6], %s360_s29 }
  0x2d   : > { %533 = dma.done.wait (%p605_p4), %s150_s30, 128  }
  0x2e   : > { %535 = vsyncadd (%p605_p4), %s150_s30, 4294967168 }
  0x2f   : > { %159 = sfence }
  0x30   : > { %v682_v0 = vld [vmem:[%s153_s3] sm:$0xff]  ;;  %vm183_vm0 = vcmask 1043456   ;;  %v557_v6 = vmov 256.0   ;;  %s362_s15 = sld [smem:[#allocation2 + $0x1]]  ;;  %v558_v12 = vmov 0   ;;  %vm200_vm2 = vcmask 1040384  }
  0x31   : > { %178 = vst [vmem:[#allocation1] ss:$2 sm:$0xff] %v682_v0  ;;  %433 = vrcp.f32 %v557_v6  ;;  %432 = vset.pattern.permute.xlu0 %v558_v12  ;;  %s363_s20 = sld [smem:[#allocation2 + $0x2]]  ;;  %vm202_vm3 = vcmask 1044480   ;;  %v559_v42 = vmov 839922192  }
  0x32   : > { %s204_s4 = sld [smem:[#allocation2]]  ;;  %v246_v43 = vunpack.c.l.s4 %v559_v42  ;;  %s371_s5 = sshll.u32 %s596_s13, 3 }
  0x33   : > { %s264_s8 = scalar_lea.hbm %s723_s2, %s371_s5  ;;  %s175_s14 = scalar_lea.vmem [#allocation7], %s360_s29 }
  0x34   : > { %v247_v44 = vunpack.c.0.s8 %v246_v43  ;;  %s266_s17 = sshll.u32 %s175_s14, 4  ;;  %s268_s18 = sshll.u32 %s264_s8, 4  ;;  %s267_s17 = int_to_ptr.vmem [resolvable:$true] %s266_s17  ;;  %s269_s18 = int_to_ptr.hbm [resolvable:$true] %s268_s18 }
  0x35   : > { %s253_s19 = scalar_lea.sflag [#allocation4], %s672_s27  ;;  %s498_s22 = sshra.s32 %s269_s18, 4  ;;  %s499_s22 = int_to_ptr.hbm [resolvable:$true] %s498_s22 }
  0x36   : > { %v209_v17 = vstv %s362_s15  ;;  %s500_s13 = scalar_lea.hbm %s499_s22, 8  ;;  %s504_s28 = scalar_lea.hbm %s723_s2, 16 }
  0x37   : > { %v434_v7 = vpop.eup %433  ;;  %v216_v18 = vstv %s363_s20  ;;  %p501_p1 = scmp.ne.s32.totalorder %s499_s22, %s500_s13  ;;  %p505_p9 = scmp.lt.s32.totalorder %s499_s22, %s723_s2 }
  0x38   : > { %v179_v1 = vld.sshfl [vmem:[#allocation1] sm:$0xff pattern:$0x75316420]  ;;  %v180_v2 = vld.sshfl [vmem:[#allocation1 + $0x8] sm:$0xff pattern:$0x75316420]  ;;  %vm194_vm1 = vweird.f32 %v434_v7  ;;  %v205_v20 = vstv %s204_s4  ;;  %p506_p10 = scmp.lt.s32.totalorder %s504_s28, %s500_s13 }
  0x39   : > { %v184_v3 = vsel %vm183_vm0, %v179_v1, 0.0  ;;  %v185_v4 = vsel %vm183_vm0, %v180_v2, 0.0  ;;  %v190_v8 = vmul.f32 256.0, %v434_v7  ;;  %p502_p4 = pnand %p501_p1, %p641_p3 }
  0x3a   : > { %v186_v5 = vadd.f32 %v185_v4, %v184_v3  ;;  %p507_p2 = por %p506_p10, %p505_p9 }
  0x3b   : > { %v191_v9 = vsub.f32 1.0, %v190_v8  ;;  %p503_p8 = pneg %p502_p4 }
  0x3c   : > { %187 = vadd.xlane.f32.xlu0 %v186_v5 }
  0x3d   : > { %v192_v10 = vmul.f32 %v434_v7, %v191_v9  ;;  %p508_p11 = pnand %p507_p2, %p503_p8 }
  0x3f   : > { %v193_v11 = vadd.f32 %v434_v7, %v192_v10 }
  0x41   : > { %v195_v13 = vsel %vm194_vm1, %v434_v7, %v193_v11 }
  0xaf   : > { %v188_v14 = vpop.xlane.xlu0 %187 }
  0xb0   : > { %v196_v15 = vmul.f32 %v195_v13, %v188_v14 }
  0xb2   : > { %v198_v16 = vrot.slane %v196_v15, 7 }
  0xb4   : > { %v201_v19 = vsel %vm200_vm2, 0.0, %v198_v16 }
  0xb5   : > { %v203_v21 = vsel %vm202_vm3, %v201_v19, 0.0 }
  0xb6   : > { %v210_v22 = vmul.f32 %v209_v17, %v203_v21  ;;  %v217_v23 = vmul.f32 %v216_v18, %v203_v21  ;;  %v206_v24 = vmul.f32 %v205_v20, %v203_v21 }
  0xb8   : > { %v212_v25 = vrot.slane %v210_v22, 1  ;;  %v219_v27 = vrot.slane %v217_v23, 2 }
  0xba   : > { %v214_v26 = vadd.f32 %v212_v25, %v206_v24 }
  0xbc   : > { %v221_v28 = vadd.f32 %v219_v27, %v214_v26 }
  0xbe   : > { %v364_v29 = vmul.f32 -1.442695, %v221_v28 }
  0xc0   : > { %435 = vpow2.f32 %v364_v29 }
  0xc6   : > { %v436_v30 = vpop.eup %435 }
  0xc7   : > { %v225_v31 = vadd.f32 1.0, %v436_v30 }
  0xc9   : > { %437 = vrcp.f32 %v225_v31  ;;  %v237_v35 = vand.u32 2147483648, %v225_v31  ;;  %v235_v37 = vand.u32 2147483647, %v225_v31  ;;  %vm231_vm5 = vweird.f32 %v225_v31 }
  0xcb   : > { %v238_v39 = vor.u32 1.1754944e-38, %v237_v35  ;;  %vm236_vm7 = vcmp.eq.f32.partialorder %v235_v37, 8.507059e+37 }
  0xcf   : > { %v438_v32 = vpop.eup %437 }
  0xd0   : > { %v227_v33 = vmul.f32 %v438_v32, %v225_v31  ;;  %vm232_vm4 = vweird.f32 %v438_v32 }
  0xd1   : > { %vm233_vm6 = vmor %vm231_vm5, %vm232_vm4 }
  0xd2   : > { %v228_v34 = vsub.f32 1.0, %v227_v33 }
  0xd4   : > { %v229_v36 = vmul.f32 %v438_v32, %v228_v34 }
  0xd6   : > { %v230_v38 = vadd.f32 %v438_v32, %v229_v36 }
  0xd8   : > { %v234_v40 = vsel %vm233_vm6, %v438_v32, %v230_v38 }
  0xd9   : > { %v239_v41 = vsel %vm236_vm7, %v238_v39, %v234_v40 }
  0xda   : > { %243 = vperm.xlu0 %432, %v239_v41  }
 0x14c   : > { %v244_v45 = vpop.permute.xlu0 %243 }
 0x14d   : > { %v248_v46 = vperm.slane %v244_v45, %v247_v44 }
 0x14f   : > { %v250_v47 = vmul.f32 %v248_v46, %v682_v0 }
 0x151   : > { %251 = vst [vmem:[%s175_s14] sm:$0xff] %v250_v47 }
 0x152   : > { %511 = shalt.err (!%p508_p11)
}
 0x153   : > { %378 = dma.vmem_to_hbm [thread:$0]  (%p641_p3), %s267_s17, 128, %s269_s18, %s253_s19  }
 0x154 PF: > { %s280_s27 = sand.u32 1, %s542_s9   ;;  %p729_p12 = scmp.ge.s32.totalorder %s554_s12, 2 }
 0x155   : > { %s281_s3 = scalar_lea.sflag [#allocation4], %s280_s27 }
 0x156   : > { %p389_p13 = pnand %p729_p12, %p610_p6 }
 0x158   : > { %p390_p0 = pneg %p389_p13 }
 0x15a   : > { %537 = dma.done.wait (%p390_p0), %s281_s3, 128  }
 0x15b   : > { %539 = vsyncadd (%p390_p0), %s281_s3, 4294967168  ;;  %p16_p5 = scmp.ge.s32.totalorder %s626_s21, 4   ;;  %s730_s9 = smov %s546_s10 }
 0x15c   : > { %s731_s10 = smov %s550_s11  ;;  %s732_s11 = smov %s636_s25 }
 0x15d   : > { %s733_s12 = smov %s626_s21  ;;  %18 = sbr.rel (!%p16_p5) target bundleno = 6 (0x6), region = 78 }
 0x162   :  { %287 = vsyncpa [#allocation3], 1 }
 0x163   :  { %289 = vsyncpa [#allocation3 + $0x1], 1 }
 0x164   :  { %290 = vsyncpa [#allocation4], 1 }
 0x165   :  { %292 = vsyncpa [#allocation4 + $0x1], 1 }
 0x166   :  { %293 = vsyncpa [#allocation5], 1 }
 0x167   :  { %295 = vsyncpa [#allocation5 + $0x1], 1 }

</bundles_post_ra>
